<compile_context>
chip_gen: v7x
topology: tpu7x:2x2x1
jax: 0.10.0
libtpu: 0.0.40
codegen_flags: <defaults>
</compile_context>

<pallas_src>
import functools

import jax
import jax.numpy as jnp
from jax.experimental import pallas as pl
from jax.experimental.pallas import tpu as pltpu

PAD3 = 8  # 3-D coords padded to 8 lanes (lane 3 carries the graph-id offset)


# ----------------------------------------------------------------------------
# Glue math: lattice from (lengths, angles)  (CDVAE lattice_params_to_matrix)
# ----------------------------------------------------------------------------
def lattice_params_to_matrix(lengths, angles):
    angles_r = jnp.deg2rad(angles)
    coses = jnp.cos(angles_r)
    sins = jnp.sin(angles_r)
    cos_a, cos_b, cos_g = coses[:, 0], coses[:, 1], coses[:, 2]
    sin_a, sin_b = sins[:, 0], sins[:, 1]
    val = jnp.clip((cos_a * cos_b - cos_g) / (sin_a * sin_b), -1.0, 1.0)
    gamma_star = jnp.arccos(val)
    a, b, c = lengths[:, 0], lengths[:, 1], lengths[:, 2]
    zeros = jnp.zeros_like(a)
    vec_a = jnp.stack([a * sin_b, zeros, a * cos_b], axis=1)
    vec_b = jnp.stack(
        [-b * sin_a * jnp.cos(gamma_star), b * sin_a * jnp.sin(gamma_star), b * cos_a],
        axis=1,
    )
    vec_c = jnp.stack([zeros, zeros, c], axis=1)
    return jnp.stack([vec_a, vec_b, vec_c], axis=1)  # (G, 3, 3)


# ----------------------------------------------------------------------------
# Kernel A: per-atom embedding + sender projection (1-D grid over atom blocks)
#   e_i  = silu(h_i @ W_atom + z[batch_i] @ W_z + b_emb)
#   hW_i = e_i @ W_h          (precomputed sender part of the edge message)
# ----------------------------------------------------------------------------
def atom_embed_kernel(h_ref, z_ref, w_atom_ref, w_z_ref, b_emb_ref, w_h_ref,
                      e_ref, hw_ref):
    hb = h_ref[...].astype(jnp.bfloat16)
    zb = z_ref[...].astype(jnp.bfloat16)
    e = (
        jnp.dot(hb, w_atom_ref[...], preferred_element_type=jnp.float32)
        + jnp.dot(zb, w_z_ref[...], preferred_element_type=jnp.float32)
        + b_emb_ref[...]
    )
    e = jax.nn.silu(e)
    e_ref[...] = e
    hw_ref[...] = jnp.dot(
        e.astype(jnp.bfloat16), w_h_ref[...], preferred_element_type=jnp.float32
    )


# ----------------------------------------------------------------------------
# Kernel B: tiled edge messages + aggregation + output heads.
# Grid = (i_block "parallel", j_block "arbitrary"); acc/facc are VMEM scratch
# accumulators; outputs are written once per i block at the last j block.
# ----------------------------------------------------------------------------
def gemnet_message_kernel(
    # scalar prefetch
    overlap_ref,      # SMEM (nb, nb) int32: 1 if tile pair can share a graph
    # inputs
    pos_i_ref,        # (TI, PAD3) f32, lane 3 = graph-id * sep
    pos_j_ref,        # (TJ, PAD3) f32
    e_i_ref,          # (TI, H)    f32 receiver atom embedding
    hw_j_ref,         # (TJ, H)    f32 sender projection e_j @ W_h
    w_r_ref,          # (R, H)     bf16
    b_msg_ref,        # (1, H)     f32
    w_out_ref,        # (H, O)     bf16
    b_out_ref,        # (1, O)     f32
    w_f_ref,          # (1, H)     f32 force-head weights
    centers_ref,      # (1, R)     f32 RBF centers
    # outputs
    out_h_ref,        # (TI, O)    f32
    out_x_ref,        # (TI, PAD3) f32
    # scratch
    acc_ref,          # (TI, H)    f32
    facc_ref,         # (TI, PAD3) f32
    *,
    cutoff,
    inv_two_sigma2,
    tile_i,
    tile_j,
):
    i_blk = pl.program_id(0)
    j_blk = pl.program_id(1)
    n_j = pl.num_programs(1)

    @pl.when(j_blk == 0)
    def _init():
        acc_ref[...] = jnp.zeros_like(acc_ref)
        facc_ref[...] = jnp.zeros_like(facc_ref)

    # Skip (i,j) tiles whose atoms are guaranteed to belong to different
    # graphs (atoms are sorted by graph).  Pure perf: the cutoff test below
    # would mask them anyway.
    @pl.when(overlap_ref[i_blk, j_blk] != 0)
    def _compute():
        pos_i = pos_i_ref[...]                                     # (TI, 8)
        pos_j = pos_j_ref[...]                                     # (TJ, 8)
        diff = pos_i[:, None, :] - pos_j[None, :, :]               # (TI, TJ, 8)
        d = jnp.sqrt(jnp.sum(diff * diff, axis=-1, keepdims=True))  # (TI, TJ, 1)

        # self-edge exclusion via global indices (no (N,N) mask input)
        ii = i_blk * tile_i + jax.lax.broadcasted_iota(
            jnp.int32, (tile_i, 1, 1), 0)
        jj = j_blk * tile_j + jax.lax.broadcasted_iota(
            jnp.int32, (1, tile_j, 1), 1)
        not_self = ii != jj                                        # (TI, TJ, 1)
        mask = ((d <= cutoff) & not_self).astype(jnp.float32)      # (TI, TJ, 1)

        # Gaussian radial basis (f32 exp), bf16 operand for the MXU matmul.
        dd = d - centers_ref[...][None, :, :]                      # (TI, TJ, R)
        rbf = jnp.exp(-(dd * dd) * inv_two_sigma2)
        rbf2 = rbf.reshape(tile_i * tile_j, -1).astype(jnp.bfloat16)
        rW = jnp.dot(rbf2, w_r_ref[...], preferred_element_type=jnp.float32)
        rW = rW.reshape(tile_i, tile_j, -1)                        # (TI, TJ, H)

        # edge message m_ij = silu(hW_j + rbf_ij W_r + b)
        m = jax.nn.silu(
            hw_j_ref[...][None, :, :] + rW + b_msg_ref[...][None, :, :]
        )                                                          # (TI, TJ, H)

        # masked aggregation into the receiver accumulator
        acc_ref[...] += jnp.sum(mask * m, axis=1)                  # (TI, H)

        # direct-force head: per-edge scalar * unit direction, masked sum
        s = jnp.sum(m * w_f_ref[...][None, :, :], axis=-1, keepdims=True)
        inv_d = pl.reciprocal(jnp.maximum(d, 1e-6), approx=True)   # (TI, TJ, 1)
        coef = mask * s * inv_d                                    # (TI, TJ, 1)
        facc_ref[...] += jnp.sum(coef * diff, axis=1)              # (TI, PAD3)

    @pl.when(j_blk == n_j - 1)
    def _finalize():
        h2 = e_i_ref[...] + acc_ref[...]                           # residual
        act = jax.nn.silu(h2).astype(jnp.bfloat16)
        out_h_ref[...] = (
            jnp.dot(act, w_out_ref[...], preferred_element_type=jnp.float32)
            + b_out_ref[...]
        )
        out_x_ref[...] = facc_ref[...]


# ----------------------------------------------------------------------------
# Wrapper
# ----------------------------------------------------------------------------
def gemnet_oc_decoder_forward(
    z, frac_x, h, num_atoms, lengths, angles, batch, params, *,
    cutoff=6.0, num_rbf=128, num_targets=100, tile=8,
    vmem_limit_bytes=64 * 1024 * 1024,
):
    f32 = jnp.float32
    n_atoms = frac_x.shape[0]
    n_graphs = num_atoms.shape[0]
    hidden = params["w_h"].shape[0]
    o_pad = params["w_out"].shape[1]
    in_size_atom = params["w_atom"].shape[0]
    latent_dim = params["w_z"].shape[0]

    # --- data.pos = frac_to_cart_coords(...) : plain XLA (tiny 3x3 contraction) ---
    lattices = lattice_params_to_matrix(lengths, angles)            # (G, 3, 3)
    pos = jnp.einsum("ni,nij->nj", frac_x.astype(f32),
                     lattices[batch].astype(f32))                   # (N, 3)

    # --- pad atoms to a multiple of the tile; encode graph id as coordinate offset ---
    n_pad = ((n_atoms + tile - 1) // tile) * tile
    pad = n_pad - n_atoms
    sep = 2.0 * cutoff + 1.0
    batch_pad = jnp.concatenate(
        [batch.astype(jnp.int32), jnp.full((pad,), n_graphs, jnp.int32)])
    pos_pad = jnp.zeros((n_pad, PAD3), f32)
    pos_pad = pos_pad.at[:n_atoms, :3].set(pos)
    # lane 3 = graph_id * sep  => cross-graph pairs are beyond the cutoff;
    # within-graph distances are exact (offset cancels exactly).
    pos_pad = pos_pad.at[:, 3].set(batch_pad.astype(f32) * sep)

    h_pad = jnp.zeros((n_pad, in_size_atom), f32).at[:n_atoms].set(h.astype(f32))
    z_atoms = z[batch].astype(f32)                                  # (N, L)
    z_pad = jnp.zeros((n_pad, latent_dim), f32).at[:n_atoms].set(z_atoms)

    nb = n_pad // tile

    # --- bf16 weights for the MXU (accumulation stays f32 in-kernel) ---
    w_atom = params["w_atom"].astype(jnp.bfloat16)
    w_z = params["w_z"].astype(jnp.bfloat16)
    w_h_w = params["w_h"].astype(jnp.bfloat16)
    w_r = params["w_r"].astype(jnp.bfloat16)
    w_out = params["w_out"].astype(jnp.bfloat16)
    b_emb = params["b_emb"].astype(f32)
    b_msg = params["b_msg"].astype(f32)
    b_out = params["b_out"].astype(f32)
    w_f = params["w_f"].astype(f32)

    # --- Kernel A: per-atom embedding + sender projection ---
    e, hw = pl.pallas_call(
        atom_embed_kernel,
        out_shape=(jax.ShapeDtypeStruct((n_pad, hidden), f32),
                   jax.ShapeDtypeStruct((n_pad, hidden), f32)),
        grid=(nb,),
        in_specs=[
            pl.BlockSpec((tile, in_size_atom), lambda i: (i, 0)),
            pl.BlockSpec((tile, latent_dim), lambda i: (i, 0)),
            pl.BlockSpec(w_atom.shape, lambda i: (0, 0)),
            pl.BlockSpec(w_z.shape, lambda i: (0, 0)),
            pl.BlockSpec(b_emb.shape, lambda i: (0, 0)),
            pl.BlockSpec(w_h_w.shape, lambda i: (0, 0)),
        ],
        out_specs=(pl.BlockSpec((tile, hidden), lambda i: (i, 0)),
                   pl.BlockSpec((tile, hidden), lambda i: (i, 0))),
        compiler_params=pltpu.CompilerParams(
            dimension_semantics=("parallel",),
            vmem_limit_bytes=vmem_limit_bytes),
    )(h_pad, z_pad, w_atom, w_z, b_emb, w_h_w)

    # --- RBF constants ---
    centers = jnp.linspace(0.0, cutoff, num_rbf, dtype=f32).reshape(1, num_rbf)
    sigma = cutoff / num_rbf
    inv_two_sigma2 = 1.0 / (2.0 * sigma * sigma)

    # --- overlap table (scalar prefetch): which (i,j) tile pairs can share a graph ---
    blocks = batch_pad.reshape(nb, tile)
    first = blocks[:, 0]
    last = blocks[:, -1]
    inter = (jnp.maximum(first[:, None], first[None, :])
             <= jnp.minimum(last[:, None], last[None, :]))
    valid = first < n_graphs                     # blocks that contain real atoms
    overlap = (inter & valid[:, None] & valid[None, :]).astype(jnp.int32)

    # --- Kernel B: tiled edge messages, aggregation, output heads ---
    kernel = functools.partial(
        gemnet_message_kernel,
        cutoff=cutoff, inv_two_sigma2=inv_two_sigma2,
        tile_i=tile, tile_j=tile)
    grid_spec = pltpu.PrefetchScalarGridSpec(
        num_scalar_prefetch=1,
        grid=(nb, nb),
        in_specs=[
            pl.BlockSpec((tile, PAD3), lambda i, j, ov: (i, 0)),     # pos_i
            pl.BlockSpec((tile, PAD3), lambda i, j, ov: (j, 0)),     # pos_j
            pl.BlockSpec((tile, hidden), lambda i, j, ov: (i, 0)),   # e_i
            pl.BlockSpec((tile, hidden), lambda i, j, ov: (j, 0)),   # hW_j
            pl.BlockSpec(w_r.shape, lambda i, j, ov: (0, 0)),
            pl.BlockSpec(b_msg.shape, lambda i, j, ov: (0, 0)),
            pl.BlockSpec(w_out.shape, lambda i, j, ov: (0, 0)),
            pl.BlockSpec(b_out.shape, lambda i, j, ov: (0, 0)),
            pl.BlockSpec(w_f.shape, lambda i, j, ov: (0, 0)),
            pl.BlockSpec(centers.shape, lambda i, j, ov: (0, 0)),
        ],
        out_specs=[
            pl.BlockSpec((tile, o_pad), lambda i, j, ov: (i, 0)),
            pl.BlockSpec((tile, PAD3), lambda i, j, ov: (i, 0)),
        ],
        scratch_shapes=[pltpu.VMEM((tile, hidden), f32),
                        pltpu.VMEM((tile, PAD3), f32)],
    )
    out_h, out_x = pl.pallas_call(
        kernel,
        out_shape=(jax.ShapeDtypeStruct((n_pad, o_pad), f32),
                   jax.ShapeDtypeStruct((n_pad, PAD3), f32)),
        grid_spec=grid_spec,
        compiler_params=pltpu.CompilerParams(
            dimension_semantics=("parallel", "arbitrary"),
            vmem_limit_bytes=vmem_limit_bytes),
    )(overlap, pos_pad, pos_pad, e, hw, w_r, b_msg, w_out, b_out, w_f, centers)

    pred_eps_x = out_x[:n_atoms, :3]
    pred_eps_h = out_h[:n_atoms, :num_targets]
    return pred_eps_x, pred_eps_h


def init_params(key, *, in_size_atom, latent_dim, hidden_dim, num_rbf, out_dim):
    ks = jax.random.split(key, 6)
    f32 = jnp.float32
    return {
        "w_atom": 0.1 * jax.random.normal(ks[0], (in_size_atom, hidden_dim), f32),
        "w_z": 0.1 * jax.random.normal(ks[1], (latent_dim, hidden_dim), f32),
        "b_emb": jnp.zeros((1, hidden_dim), f32),
        "w_h": 0.1 * jax.random.normal(ks[2], (hidden_dim, hidden_dim), f32),
        "w_r": 0.1 * jax.random.normal(ks[3], (num_rbf, hidden_dim), f32),
        "b_msg": jnp.zeros((1, hidden_dim), f32),
        "w_out": 0.1 * jax.random.normal(ks[4], (hidden_dim, out_dim), f32),
        "b_out": jnp.zeros((1, out_dim), f32),
        "w_f": 0.1 * jax.random.normal(ks[5], (1, hidden_dim), f32),
    }


if __name__ == "__main__":
    key = jax.random.PRNGKey(0)
    ks = jax.random.split(key, 6)

    # Small shapes consistent with the module defaults:
    # hidden_dim=128, latent_dim=256, in_size_atom=256, radius=6.0,
    # output_atom_types=MAX_ATOMIC_NUM=100 (lane-padded to 128 inside).
    num_atoms = jnp.array([10, 6], dtype=jnp.int32)
    n_graphs = 2
    n_atoms = 16
    hidden_dim = 128
    latent_dim = 256
    in_size_atom = 256
    output_atom_types = 100
    o_pad = 128
    num_rbf = 128
    cutoff = 6.0
    tile = 8

    frac_x = jax.random.uniform(ks[0], (n_atoms, 3), dtype=jnp.float32)
    lengths = 4.0 + 2.0 * jax.random.uniform(ks[1], (n_graphs, 3), dtype=jnp.float32)
    angles = 90.0 + 5.0 * jax.random.normal(ks[2], (n_graphs, 3), dtype=jnp.float32)
    z = jax.random.normal(ks[3], (n_graphs, latent_dim), dtype=jnp.float32)
    h = jax.random.normal(ks[4], (n_atoms, in_size_atom), dtype=jnp.float32)
    batch = jnp.repeat(jnp.arange(n_graphs), num_atoms, total_repeat_length=n_atoms)

    params = init_params(
        ks[5],
        in_size_atom=in_size_atom,
        latent_dim=latent_dim,
        hidden_dim=hidden_dim,
        num_rbf=num_rbf,
        out_dim=o_pad,
    )

    pred_eps_x, pred_eps_h = gemnet_oc_decoder_forward(
        z, frac_x, h, num_atoms, lengths, angles, batch, params,
        cutoff=cutoff, num_rbf=num_rbf, num_targets=output_atom_types, tile=tile,
    )
    pred_eps_x, pred_eps_h = jax.block_until_ready((pred_eps_x, pred_eps_h))
    assert pred_eps_x.shape == (n_atoms, 3)
    assert pred_eps_h.shape == (n_atoms, output_atom_types)
    assert bool(jnp.all(jnp.isfinite(pred_eps_x)))
    assert bool(jnp.all(jnp.isfinite(pred_eps_h)))
    print("KERNEL_OK")
</pallas_src>

<mosaic_0001>
module attributes {stable_mosaic.version = 11 : i64} {
  func.func @atom_embed_kernel(%arg0: i32, %arg1: memref<8x256xf32, #tpu.memory_space<vmem>>, %arg2: memref<8x256xf32, #tpu.memory_space<vmem>>, %arg3: memref<256x128xbf16, #tpu.memory_space<vmem>>, %arg4: memref<256x128xbf16, #tpu.memory_space<vmem>>, %arg5: memref<1x128xf32, #tpu.memory_space<vmem>>, %arg6: memref<128x128xbf16, #tpu.memory_space<vmem>>, %arg7: memref<8x128xf32, #tpu.memory_space<vmem>>, %arg8: memref<8x128xf32, #tpu.memory_space<vmem>>) attributes {dimension_semantics = [#tpu.dimension_semantics<parallel>], iteration_bounds = array<i64: 2>, scalar_prefetch = 0 : i64, scratch_operands = 0 : i64, tpu.core_type = #tpu.core_type<tc>, window_params = [{transform_indices = @transform_0, window_bounds = array<i64: 8, 256>}, {transform_indices = @transform_1, window_bounds = array<i64: 8, 256>}, {pipeline_mode = #tpu.pipeline_mode<synchronous>, transform_indices = @transform_2, window_bounds = array<i64: 256, 128>}, {pipeline_mode = #tpu.pipeline_mode<synchronous>, transform_indices = @transform_3, window_bounds = array<i64: 256, 128>}, {pipeline_mode = #tpu.pipeline_mode<synchronous>, transform_indices = @transform_4, window_bounds = array<i64: 1, 128>}, {pipeline_mode = #tpu.pipeline_mode<synchronous>, transform_indices = @transform_5, window_bounds = array<i64: 128, 128>}, {transform_indices = @transform_6, window_bounds = array<i64: 8, 128>}, {transform_indices = @transform_7, window_bounds = array<i64: 8, 128>}]} {
    %c0 = arith.constant 0 : index
    %c0_0 = arith.constant 0 : index
    %0 = vector.load %arg1[%c0, %c0_0] : memref<8x256xf32, #tpu.memory_space<vmem>>, vector<8x256xf32>
    %1 = arith.truncf %0 : vector<8x256xf32> to vector<8x256xbf16>
    %c0_1 = arith.constant 0 : index
    %c0_2 = arith.constant 0 : index
    %2 = vector.load %arg2[%c0_1, %c0_2] : memref<8x256xf32, #tpu.memory_space<vmem>>, vector<8x256xf32>
    %3 = arith.truncf %2 : vector<8x256xf32> to vector<8x256xbf16>
    %c0_3 = arith.constant 0 : index
    %c0_4 = arith.constant 0 : index
    %4 = vector.load %arg3[%c0_3, %c0_4] : memref<256x128xbf16, #tpu.memory_space<vmem>>, vector<256x128xbf16>
    %cst = arith.constant dense<0.000000e+00> : vector<8x128xf32>
    %5 = tpu.matmul %1, %4, %cst {dimension_numbers = #tpu.dot_dimension_numbers<[1], [0], [0], [1], [0, 0, 1, 1], [], []>} : vector<8x256xbf16>, vector<256x128xbf16>, vector<8x128xf32> -> vector<8x128xf32>
    %c0_5 = arith.constant 0 : index
    %c0_6 = arith.constant 0 : index
    %6 = vector.load %arg4[%c0_5, %c0_6] : memref<256x128xbf16, #tpu.memory_space<vmem>>, vector<256x128xbf16>
    %cst_7 = arith.constant dense<0.000000e+00> : vector<8x128xf32>
    %7 = tpu.matmul %3, %6, %cst_7 {dimension_numbers = #tpu.dot_dimension_numbers<[1], [0], [0], [1], [0, 0, 1, 1], [], []>} : vector<8x256xbf16>, vector<256x128xbf16>, vector<8x128xf32> -> vector<8x128xf32>
    %8 = arith.addf %5, %7 : vector<8x128xf32>
    %c0_8 = arith.constant 0 : index
    %c0_9 = arith.constant 0 : index
    %9 = vector.load %arg5[%c0_8, %c0_9] : memref<1x128xf32, #tpu.memory_space<vmem>>, vector<1x128xf32>
    %10 = vector.broadcast %9 : vector<1x128xf32> to vector<8x128xf32>
    %11 = arith.addf %8, %10 : vector<8x128xf32>
    %12 = arith.negf %11 : vector<8x128xf32>
    %13 = math.exp %12 : vector<8x128xf32>
    %cst_10 = arith.constant 1.000000e+00 : f32
    %14 = vector.broadcast %cst_10 : f32 to vector<8x128xf32>
    %15 = arith.addf %14, %13 : vector<8x128xf32>
    %16 = arith.divf %14, %15 : vector<8x128xf32>
    %17 = arith.mulf %11, %16 : vector<8x128xf32>
    %c0_11 = arith.constant 0 : index
    %c0_12 = arith.constant 0 : index
    %18 = vector.load %arg7[%c0_11, %c0_12] : memref<8x128xf32, #tpu.memory_space<vmem>>, vector<8x128xf32>
    tpu.vector_store %arg7[%c0_11, %c0_12], %17 {strides = array<i32>} : memref<8x128xf32, #tpu.memory_space<vmem>>, vector<8x128xf32>,
    %19 = arith.truncf %17 : vector<8x128xf32> to vector<8x128xbf16>
    %c0_13 = arith.constant 0 : index
    %c0_14 = arith.constant 0 : index
    %20 = vector.load %arg6[%c0_13, %c0_14] : memref<128x128xbf16, #tpu.memory_space<vmem>>, vector<128x128xbf16>
    %cst_15 = arith.constant dense<0.000000e+00> : vector<8x128xf32>
    %21 = tpu.matmul %19, %20, %cst_15 {dimension_numbers = #tpu.dot_dimension_numbers<[1], [0], [0], [1], [0, 0, 1, 1], [], []>} : vector<8x128xbf16>, vector<128x128xbf16>, vector<8x128xf32> -> vector<8x128xf32>
    %c0_16 = arith.constant 0 : index
    %c0_17 = arith.constant 0 : index
    %22 = vector.load %arg8[%c0_16, %c0_17] : memref<8x128xf32, #tpu.memory_space<vmem>>, vector<8x128xf32>
    tpu.vector_store %arg8[%c0_16, %c0_17], %21 {strides = array<i32>} : memref<8x128xf32, #tpu.memory_space<vmem>>, vector<8x128xf32>,
    return
  }
  func.func @transform_0(%arg0: i32) -> (i32, i32) {
    %c0_i32 = arith.constant 0 : i32
    %c0_i32_0 = arith.constant 0 : i32
    return %arg0, %c0_i32 : i32, i32
  }
  func.func @transform_1(%arg0: i32) -> (i32, i32) {
    %c0_i32 = arith.constant 0 : i32
    %c0_i32_0 = arith.constant 0 : i32
    return %arg0, %c0_i32 : i32, i32
  }
  func.func @transform_2(%arg0: i32) -> (i32, i32) {
    %c0_i32 = arith.constant 0 : i32
    %c0_i32_0 = arith.constant 0 : i32
    %c0_i32_1 = arith.constant 0 : i32
    return %c0_i32, %c0_i32_0 : i32, i32
  }
  func.func @transform_3(%arg0: i32) -> (i32, i32) {
    %c0_i32 = arith.constant 0 : i32
    %c0_i32_0 = arith.constant 0 : i32
    %c0_i32_1 = arith.constant 0 : i32
    return %c0_i32, %c0_i32_0 : i32, i32
  }
  func.func @transform_4(%arg0: i32) -> (i32, i32) {
    %c0_i32 = arith.constant 0 : i32
    %c0_i32_0 = arith.constant 0 : i32
    %c0_i32_1 = arith.constant 0 : i32
    return %c0_i32, %c0_i32_0 : i32, i32
  }
  func.func @transform_5(%arg0: i32) -> (i32, i32) {
    %c0_i32 = arith.constant 0 : i32
    %c0_i32_0 = arith.constant 0 : i32
    %c0_i32_1 = arith.constant 0 : i32
    return %c0_i32, %c0_i32_0 : i32, i32
  }
  func.func @transform_6(%arg0: i32) -> (i32, i32) {
    %c0_i32 = arith.constant 0 : i32
    %c0_i32_0 = arith.constant 0 : i32
    return %arg0, %c0_i32 : i32, i32
  }
  func.func @transform_7(%arg0: i32) -> (i32, i32) {
    %c0_i32 = arith.constant 0 : i32
    %c0_i32_0 = arith.constant 0 : i32
    return %arg0, %c0_i32 : i32, i32
  }
}

</mosaic_0001>

<bundles_post_ra>
// kernel: tpu_custom_call.1
= control target key start
LH: loop header
LB: loop body
LE: loop exit
PB: predicated region body
PF: predicated region fallthrough
CT: control target
= control target key end

     0   :  { %s2062_s0 = inlined_call_operand.hbm [shape: f32[16,256], index: 0, kind: input, shape index: {}]   ;;  %s2063_s1 = inlined_call_operand.hbm [shape: f32[16,256], index: 1, kind: input, shape index: {}]   ;;  %s2064_s2 = inlined_call_operand.hbm [shape: bf16[256,128], index: 2, kind: input, shape index: {}]   ;;  %s2065_s3 = inlined_call_operand.hbm [shape: bf16[256,128], index: 3, kind: input, shape index: {}]   ;;  %s2066_s4 = inlined_call_operand.hbm [shape: f32[1,128], index: 4, kind: input, shape index: {}]   ;;  %s2067_s5 = inlined_call_operand.hbm [shape: bf16[128,128], index: 5, kind: input, shape index: {}]   ;;  %s2068_s6 = inlined_call_operand.hbm [shape: f32[16,128], index: 6, kind: output, shape index: {0}]   ;;  %s2069_s7 = inlined_call_operand.hbm [shape: f32[16,128], index: 7, kind: output, shape index: {1}]  }
   0x1   :  { %2074 = sst [smem:[#allocation23_spill]] %s2064_s2 }
   0x2   :  { %2075 = sst [smem:[#allocation24_spill]] %s2065_s3 }
   0x3   :  { %2076 = sst [smem:[#allocation25_spill]] %s2066_s4 }
   0x4   :  { %2077 = sst [smem:[#allocation26_spill]] %s2067_s5 }
   0x5   :  { %13 = vsyncpa [#allocation3], 0 }
   0x6   :  { %15 = vsyncpa [#allocation3 + $0x1], 0 }
   0x7   :  { %16 = vsyncpa [#allocation6], 0 }
   0x8   :  { %18 = vsyncpa [#allocation6 + $0x1], 0 }
   0x9   :  { %19 = vsyncpa [#allocation9], 0 }
   0xa   :  { %20 = vsyncpa [#allocation12], 0 }
   0xb   :  { %21 = vsyncpa [#allocation4], 0 }
   0xc   :  { %23 = vsyncpa [#allocation4 + $0x1], 0 }
   0xd   :  { %24 = vsyncpa [#allocation15], 0 }
   0xe   :  { %26 = vsyncpa [#allocation15 + $0x1], 0  ;;  %s1692_s24 = smov 0   ;;  %s1694_s25 = smov 0  }
   0xf   :  { %s1696_s26 = smov 0   ;;  %s1698_s27 = smov 0  }
  0x10 LB: > { %s1640_s28 = smov [#allocation7]   ;;  %s1713_s30 = sadd.s32 4294967295, %s1638_s27   ;;  %s1638_s27 = sphi %s1698_s27, %s2105_s27   ;;  %s1634_s26 = sphi %s1696_s26, %s2104_s26   ;;  %s1630_s25 = sphi %s1694_s25, %s2103_s25   ;;  %s1626_s24 = sphi %s1692_s24, %s2102_s24  }
  0x11   : > { %s237_s29 = sshll.u32 %s1640_s28, 4  ;;  %p1063_p0 = scmp.ge.s32.totalorder %s1638_s27, 1  ;;  %s1718_s29 = int_to_ptr.vmem [resolvable:$true] %s237_s29 }
  0x12   : > { %p2070_p1 = scmp.eq.s32.totalorder %s1713_s30, 0  ;;  %p225_p2 = scmp.lt.s32.totalorder %s1638_s27, 3 }
  0x13   : > { %s1641_s9 = smov [#allocation8]   ;;  %s1642_s12 = smov [#allocation10]  }
  0x14   : > { %p1720_p3 = pnand %p1063_p0, %p225_p2  ;;  %s250_s10 = sshll.u32 %s1641_s9, 4  ;;  %s1733_s10 = int_to_ptr.vmem [resolvable:$true] %s250_s10 }
  0x15   : > { %s264_s13 = sshll.u32 %s1642_s12, 4  ;;  %s2080_s2 = sld [smem:[#allocation23_spill]]  ;;  %s1735_s13 = int_to_ptr.vmem [resolvable:$true] %s264_s13 }
  0x16   : > { %s2078_s8 = scalar_select %p1720_p3, 1, 0 }
  0x17   : > { %p1231_p5 = pneg %p1720_p3 }
  0x19   : > { %p1729_p6 = pnand %p1231_p5, %p2070_p1 }
  0x1b   : > { %s1352_s16 = scalar_lea.hbm %s2080_s2, 2048  ;;  %p1745_p8 = pneg %p1729_p6 }
  0x1c   : > { %p1353_p7 = scmp.ne.s32.totalorder %s2080_s2, %s1352_s16  ;;  %p1359_p11 = scmp.lt.u32.totalorder %s1352_s16, %s2080_s2 }
  0x1e   : > { %p1355_p9 = pnand %p1745_p8, %p1353_p7 }
  0x20   : > { %p1356_p10 = pneg %p1355_p9 }
  0x22   : > { %p1361_p12 = pnand %p1359_p11, %p1356_p10 }
  0x24   : > { %1364 = shalt.err (!%p1361_p12)
}
  0x25   : > { %s1365_s22 = scalar_lea.vmem %s1718_s29, 2048  ;;  %p1373_p5 = scmp.lt.s32.totalorder %s1718_s29, %s1718_s29 }
  0x26   : > { %p1366_p13 = scmp.ne.s32.totalorder %s1718_s29, %s1365_s22  ;;  %p1374_p4 = scmp.lt.s32.totalorder %s1365_s22, %s1365_s22 }
  0x28   : > { %p1368_p0 = pnand %p1366_p13, %p1745_p8  ;;  %p1375_p7 = por %p1374_p4, %p1373_p5 }
  0x2a   : > { %p1369_p2 = pneg %p1368_p0 }
  0x2c   : > { %p1376_p9 = pnand %p1375_p7, %p1369_p2 }
  0x2e   : > { %1379 = shalt.err (!%p1376_p9)
}
  0x2f   : > { %s1643_s23 = smov 64   ;;  %s1644_s28 = smov 4  }
  0x30   : > { %1234 = dma.hbm_to_vmem [thread:$0]  (!%p1729_p6), %s2080_s2, 2048, %s1718_s29, [#allocation6], %s1643_s23, %s1643_s23, %s1644_s28  }
  0x31   : > { %s2082_s3 = sld [smem:[#allocation24_spill]] }
  0x37   : > { %s1380_s16 = scalar_lea.hbm %s2082_s3, 2048 }
  0x38   : > { %p1381_p4 = scmp.ne.s32.totalorder %s2082_s3, %s1380_s16  ;;  %p1387_p12 = scmp.lt.u32.totalorder %s1380_s16, %s2082_s3 }
  0x3a   : > { %p1383_p10 = pnand %p1381_p4, %p1745_p8 }
  0x3c   : > { %p1384_p11 = pneg %p1383_p10 }
  0x3e   : > { %p1389_p13 = pnand %p1387_p12, %p1384_p11 }
  0x40   : > { %1392 = shalt.err (!%p1389_p13)
}
  0x41   : > { %s1393_s29 = scalar_lea.vmem %s1733_s10, 2048  ;;  %p1401_p7 = scmp.lt.s32.totalorder %s1733_s10, %s1733_s10 }
  0x42   : > { %p1394_p0 = scmp.ne.s32.totalorder %s1733_s10, %s1393_s29  ;;  %p1402_p9 = scmp.lt.s32.totalorder %s1393_s29, %s1393_s29 }
  0x44   : > { %p1396_p2 = pnand %p1394_p0, %p1745_p8  ;;  %p1403_p4 = por %p1402_p9, %p1401_p7 }
  0x46   : > { %p1397_p5 = pneg %p1396_p2 }
  0x48   : > { %p1404_p10 = pnand %p1403_p4, %p1397_p5 }
  0x4a   : > { %1407 = shalt.err (!%p1404_p10)
}
  0x4b   : > { %1237 = dma.hbm_to_vmem [thread:$0]  (!%p1729_p6), %s2082_s3, 2048, %s1733_s10, [#allocation9], %s1643_s23, %s1643_s23, %s1644_s28  }
  0x4c   : > { %s2083_s4 = sld [smem:[#allocation25_spill]] }
  0x52   : > { %s1408_s15 = scalar_lea.hbm %s2083_s4, 16 }
  0x53   : > { %p1409_p11 = scmp.ne.s32.totalorder %s2083_s4, %s1408_s15  ;;  %p1415_p0 = scmp.lt.u32.totalorder %s1408_s15, %s2083_s4 }
  0x55   : > { %p1411_p12 = pnand %p1409_p11, %p1745_p8 }
  0x57   : > { %p1412_p13 = pneg %p1411_p12 }
  0x59   : > { %p1417_p2 = pnand %p1415_p0, %p1412_p13 }
  0x5b   : > { %1420 = shalt.err (!%p1417_p2)
}
  0x5c   : > { %s1421_s10 = scalar_lea.vmem %s1735_s13, 16  ;;  %s1428_s21 = scalar_lea.vmem %s1735_s13, 32 }
  0x5d   : > { %p1422_p5 = scmp.ne.s32.totalorder %s1735_s13, %s1421_s10  ;;  %p1429_p4 = scmp.lt.s32.totalorder %s1735_s13, %s1735_s13 }
  0x5e   : > { %p1430_p10 = scmp.lt.s32.totalorder %s1428_s21, %s1421_s10 }
  0x5f   : > { %p1424_p7 = pnand %p1422_p5, %p1745_p8 }
  0x60   : > { %p1431_p11 = por %p1430_p10, %p1429_p4 }
  0x61   : > { %p1425_p9 = pneg %p1424_p7 }
  0x63   : > { %p1432_p12 = pnand %p1431_p11, %p1425_p9 }
  0x65   : > { %1435 = shalt.err (!%p1432_p12)
}
  0x66   : > { %1240 = dma.hbm_to_vmem [thread:$0]  (!%p1729_p6), %s2083_s4, 16, %s1735_s13, [#allocation9]  }
  0x67   : > { %s1645_s9 = smov [#allocation11]   ;;  %s2084_s5 = sld [smem:[#allocation26_spill]] }
  0x68   : > { %s274_s12 = sshll.u32 %s1645_s9, 4  ;;  %s275_s12 = int_to_ptr.vmem [resolvable:$true] %s274_s12 }
  0x6d   : > { %s1436_s16 = scalar_lea.hbm %s2084_s5, 1024 }
  0x6e   : > { %p1437_p13 = scmp.ne.s32.totalorder %s2084_s5, %s1436_s16  ;;  %p1443_p5 = scmp.lt.u32.totalorder %s1436_s16, %s2084_s5 }
  0x70   : > { %p1439_p0 = pnand %p1437_p13, %p1745_p8 }
  0x72   : > { %p1440_p2 = pneg %p1439_p0 }
  0x74   : > { %p1445_p7 = pnand %p1443_p5, %p1440_p2 }
  0x76   : > { %1448 = shalt.err (!%p1445_p7)
}
  0x77   : > { %s1449_s13 = scalar_lea.vmem %s275_s12, 1024  ;;  %p1457_p11 = scmp.lt.s32.totalorder %s275_s12, %s275_s12 }
  0x78   : > { %p1450_p9 = scmp.ne.s32.totalorder %s275_s12, %s1449_s13  ;;  %p1458_p12 = scmp.lt.s32.totalorder %s1449_s13, %s1449_s13 }
  0x7a   : > { %p1452_p4 = pnand %p1450_p9, %p1745_p8  ;;  %p1459_p1 = por %p1458_p12, %p1457_p11 }
  0x7c   : > { %p1453_p10 = pneg %p1452_p4 }
  0x7e   : > { %p1460_p3 = pnand %p1459_p1, %p1453_p10 }
  0x80   : > { %1463 = shalt.err (!%p1460_p3)
}
  0x81   : > { %1243 = dma.hbm_to_vmem [thread:$0]  (!%p1729_p6), %s2084_s5, 1024, %s275_s12, [#allocation12], %s1643_s23, %s1643_s23, %s1644_s28  }
  0x82   : > { %s1062_s11 = sadd.s32 4294967294, %s1638_s27   ;;  %s1842_s19 = sadd.s32 1, %s1638_s27  }
  0x83   : > { %s36_s22 = ssub.s32 %s1638_s27, %s1842_s19  ;;  %s39_s9 = sadd.s32 1, %s1634_s26 }
  0x84   : > { %p37_p1 = scmp.eq.s32.totalorder %s36_s22, 0  ;;  %p46_p3 = scmp.ne.s32.totalorder %s1634_s26, %s1630_s25 }
  0x85   : > { %p47_p8 = scmp.eq.s32.totalorder %s1638_s27, 0  ;;  %p52_p13 = scmp.ne.s32.totalorder %s1630_s25, %s1626_s24 }
  0x86   : > { %s1853_s14 = scalar_select %p37_p1, %s1634_s26, %s39_s9  }
  0x87   : > { %p1855_p0 = por %p47_p8, %p46_p3  ;;  %p2086_p2 = scmp.eq.s32.totalorder %s1713_s30, 0 }
  0x88   : > { %p186_p5 = scmp.eq.s32.totalorder %s1713_s30, 1  ;;  %p192_p7 = scmp.eq.s32.totalorder %s1062_s11, 1 }
  0x89   : > { %p1861_p6 = por %p2086_p2, %p52_p13  ;;  %p1262_p9 = scmp.lt.s32.totalorder %s1638_s27, 2 }
  0x8a   : > { %s288_s28 = sand.u32 1, %s1634_s26   ;;  %p1868_p4 = por %p186_p5, %p46_p3 }
  0x8b   : > { %s2087_s23 = scalar_select %p1861_p6, 1, 0 }
  0x8c   : > { %s2088_s12 = scalar_select %p1868_p4, 1, 0 }
  0x8d   : > { %p1872_p10 = por %p192_p7, %p52_p13  ;;  %s1876_s17 = sshll.u32 %s288_s28, 4 }
  0x8e   : > { %s1132_s18 = sshll.u32 %s1638_s27, 8  ;;  %s292_s21 = scalar_lea.vmem [#allocation2], %s1876_s17 }
  0x8f   : > { %s2089_s16 = scalar_select %p1872_p10, 1, 0 }
  0x90   : > { %s1882_s13 = scalar_lea.hbm %s2062_s0, %s1132_s18  ;;  %s300_s29 = sshll.u32 %s292_s21, 4  ;;  %s1885_s29 = int_to_ptr.vmem [resolvable:$true] %s300_s29 }
  0x91   : > { %p1889_p11 = pnand %p1262_p9, %p1855_p0  ;;  %s1896_s20 = scalar_lea.hbm %s2063_s1, %s1132_s18 }
  0x92   : > { %s307_s10 = sand.u32 1, %s1638_s27   ;;  %s289_s2 = scalar_lea.sflag [#allocation3], %s288_s28 }
  0x93   : > { %s1464_s3 = scalar_lea.hbm %s1882_s13, 256  ;;  %p1466_p1 = pneg %p1889_p11 }
  0x94   : > { %p1465_p12 = scmp.ne.s32.totalorder %s1882_s13, %s1464_s3  ;;  %s1469_s4 = scalar_lea.hbm %s2062_s0, 512 }
  0x95   : > { %p1470_p13 = scmp.lt.u32.totalorder %s1882_s13, %s2062_s0  ;;  %p1471_p0 = scmp.lt.u32.totalorder %s1469_s4, %s1464_s3 }
  0x96   : > { %p1467_p3 = pnand %p1466_p1, %p1465_p12  ;;  %p1473_p5 = scmp.lt.u32.totalorder %s1464_s3, %s1882_s13 }
  0x97   : > { %p1472_p2 = por %p1471_p0, %p1470_p13 }
  0x98   : > { %p1468_p8 = pneg %p1467_p3 }
  0x99   : > { %p1474_p7 = por %p1473_p5, %p1472_p2 }
  0x9b   : > { %p1475_p9 = pnand %p1474_p7, %p1468_p8 }
  0x9d   : > { %1478 = shalt.err (!%p1475_p9)
}
  0x9e   : > { %s1479_s28 = scalar_lea.vmem %s1885_s29, 256  ;;  %s1646_s18 = smov [#allocation2]  }
  0x9f   : > { %p1480_p12 = scmp.ne.s32.totalorder %s1885_s29, %s1479_s28  ;;  %s1484_s9 = sshll.u32 %s1646_s18, 4  ;;  %s1485_s9 = int_to_ptr.vmem [resolvable:$false] %s1484_s9 }
  0xa0   : > { %s1486_s5 = scalar_lea.vmem %s1485_s9, 512  ;;  %p1487_p4 = scmp.lt.s32.totalorder %s1885_s29, %s1485_s9 }
  0xa1   : > { %p1482_p3 = pnand %p1480_p12, %p1466_p1  ;;  %p1488_p13 = scmp.lt.s32.totalorder %s1486_s5, %s1479_s28 }
  0xa3   : > { %p1483_p10 = pneg %p1482_p3  ;;  %p1489_p0 = por %p1488_p13, %p1487_p4 }
  0xa5   : > { %p1490_p2 = pnand %p1489_p0, %p1483_p10 }
  0xa7   : > { %1493 = shalt.err (!%p1490_p2)
}
  0xa8   : > { %1247 = dma.hbm_to_vmem [thread:$0]  (!%p1889_p11), %s1882_s13, 256, %s1885_s29, %s289_s2  }
  0xa9   : > { %s311_s3 = scalar_lea.vmem [#allocation5], %s1876_s17  ;;  %s308_s15 = scalar_lea.sflag [#allocation6], %s307_s10 }
  0xaa   : > { %s319_s4 = sshll.u32 %s311_s3, 4  ;;  %s1494_s21 = scalar_lea.hbm %s1896_s20, 256  ;;  %s320_s4 = int_to_ptr.vmem [resolvable:$true] %s319_s4 }
  0xab   : > { %p1495_p4 = scmp.ne.s32.totalorder %s1896_s20, %s1494_s21  ;;  %s1499_s18 = scalar_lea.hbm %s2063_s1, 512 }
  0xac   : > { %p1500_p5 = scmp.lt.u32.totalorder %s1896_s20, %s2063_s1  ;;  %p1501_p7 = scmp.lt.u32.totalorder %s1499_s18, %s1494_s21 }
  0xad   : > { %p1497_p10 = pnand %p1495_p4, %p1466_p1  ;;  %p1503_p12 = scmp.lt.u32.totalorder %s1494_s21, %s1896_s20 }
  0xae   : > { %p1502_p9 = por %p1501_p7, %p1500_p5 }
  0xaf   : > { %p1498_p8 = pneg %p1497_p10 }
  0xb0   : > { %p1504_p3 = por %p1503_p12, %p1502_p9 }
  0xb2   : > { %p1505_p13 = pnand %p1504_p3, %p1498_p8 }
  0xb4   : > { %1508 = shalt.err (!%p1505_p13)
}
  0xb5   : > { %s1509_s2 = scalar_lea.vmem %s320_s4, 256  ;;  %s1647_s17 = smov [#allocation5]  }
  0xb6   : > { %p1510_p0 = scmp.ne.s32.totalorder %s320_s4, %s1509_s2  ;;  %s1514_s13 = sshll.u32 %s1647_s17, 4  ;;  %s1515_s13 = int_to_ptr.vmem [resolvable:$false] %s1514_s13 }
  0xb7   : > { %s1516_s29 = scalar_lea.vmem %s1515_s13, 512  ;;  %p1517_p10 = scmp.lt.s32.totalorder %s320_s4, %s1515_s13 }
  0xb8   : > { %p1512_p2 = pnand %p1510_p0, %p1466_p1  ;;  %p1518_p6 = scmp.lt.s32.totalorder %s1516_s29, %s1509_s2 }
  0xba   : > { %p1513_p4 = pneg %p1512_p2  ;;  %p1519_p5 = por %p1518_p6, %p1517_p10 }
  0xbc   : > { %p1520_p7 = pnand %p1519_p5, %p1513_p4 }
  0xbe   : > { %1523 = shalt.err (!%p1520_p7)
}
  0xbf   : > { %1250 = dma.hbm_to_vmem [thread:$0]  (!%p1889_p11), %s1896_s20, 256, %s320_s4, %s308_s15  }
  0xc0   : > { %p2091_p8 = scmp.ne.s32.totalorder %s2078_s8, 0 }
  0xc1   : > { %s1949_s10 = sand.u32 (!%p2091_p8), 1, %s1630_s25   ;;  %p2092_p6 = scmp.ne.s32.totalorder (!%p2091_p8), %s2087_s23, 0 }
  0xc2   : > { %328 = sbr.rel (%p2091_p8) target bundleno = 726 (0x2d6), region = 44  ;;  %s1076_s3 = sshll.u32 (!%p2091_p8), %s1949_s10, 4 }
  0xc3   : > { %s331_s21 = scalar_lea.sflag (!%p2091_p8), [#allocation3], %s1949_s10  ;;  %s1953_s22 = scalar_lea.vmem (!%p2091_p8), [#allocation2], %s1076_s3 }
  0xc9   : > { %1597 = dma.done.wait (%p2092_p6), %s331_s21, 256  }
  0xca   : > { %1599 = vsyncadd (%p2092_p6), %s331_s21, 4294967040  ;;  %s339_s11 = sand.u32 1, %s1713_s30   ;;  %s1960_s20 = scalar_lea.vmem [#allocation5], %s1076_s3 }
  0xcb   : > { %s340_s8 = scalar_lea.sflag [#allocation6], %s339_s11 }
  0xcc   : > { %1601 = dma.done.wait (%p2092_p6), %s340_s8, 256  }
  0xcd   : > { %1603 = vsyncadd (%p2092_p6), %s340_s8, 4294967040  ;;  %p2093_p11 = scmp.eq.s32.totalorder %s1713_s30, 0 }
  0xcf   : > { %1605 = dma.done.wait (%p2093_p11), [#allocation6], 2048   ;;  %p2094_p1 = pmov %p2093_p11 }
  0xd1   : > { %1607 = vsyncadd (%p2094_p1), [#allocation6], 4294965248  ;;  %p2095_p9 = pmov %p2094_p1 }
  0xd2   : > { %p2096_p12 = pmov %p2094_p1 }
  0xd3   : > { %1609 = dma.done.wait (%p2095_p9), [#allocation9], 2064  }
  0xd4   : > { %1611 = vsyncadd (%p2096_p12), [#allocation9], 4294965232  ;;  %p2097_p3 = pmov %p2094_p1 }
  0xd5   : > { %p2098_p13 = pmov %p2094_p1 }
  0xd6   : > { %1613 = dma.done.wait (%p2097_p3), [#allocation12], 1024  }
  0xd7   : > { %1615 = vsyncadd (%p2098_p13), [#allocation12], 4294966272  ;;  %v1308_v0 = vld [vmem:[#allocation8 + $0x40] sm:$0xff]   ;;  %v1312_v4 = vld [vmem:[#allocation8 + $0x48] sm:$0xff]   ;;  %v1648_v41 = vmov 0.0   ;;  %vm1649_vm0 = vmmov 0  }
  0xd8   : > { %v1309_v1 = vld [vmem:[#allocation7 + $0x40] sm:$0xff]   ;;  %1134 = vmatprep.subr.bf16.mxu0 %v1308_v0  ;;  %v1313_v5 = vld [vmem:[#allocation7 + $0x48] sm:$0xff]   ;;  %v1316_v8 = vld [vmem:[#allocation8 + $0x50] sm:$0xff]   ;;  %s1082_s23 = sshll.u32 %s1949_s10, 3  ;;  %s1128_s15 = sshll.u32 %s1713_s30, 7 }
  0xd9   : > { %v1310_v2 = vld [vmem:[#allocation8] sm:$0xff]   ;;  %1156 = vmatprep.subr.bf16.mxu1 %v1309_v1  ;;  %v1314_v6 = vld [vmem:[#allocation8 + $0x8] sm:$0xff]   ;;  %v1317_v9 = vld [vmem:[#allocation7 + $0x50] sm:$0xff]   ;;  %s392_s4 = scalar_lea.vmem [#allocation13], %s1082_s23  ;;  %s1991_s9 = scalar_lea.hbm %s2068_s6, %s1128_s15 }
  0xda   : > { %v1311_v3 = vld [vmem:[#allocation7] sm:$0xff]   ;;  %1135 = vmatpush3.bf16.msra.mxu0 %v1310_v2  ;;  %v1315_v7 = vld [vmem:[#allocation7 + $0x8] sm:$0xff]   ;;  %v1318_v10 = vld [vmem:[#allocation8 + $0x10] sm:$0xff]   ;;  %s886_s5 = sshll.u32 %s392_s4, 4  ;;  %s868_s2 = scalar_lea.sflag [#allocation4], %s1949_s10  ;;  %s887_s5 = int_to_ptr.vmem [resolvable:$true] %s886_s5 }
  0xdb   : > { %1157 = vmatpush3.bf16.msra.mxu1 %v1311_v3  ;;  %1136 = vmatprep.subr.bf16.mxu0 %v1312_v4  ;;  %v1319_v11 = vld [vmem:[#allocation7 + $0x10] sm:$0xff]   ;;  %v1320_v12 = vld [vmem:[#allocation8 + $0x58] sm:$0xff]   ;;  %v1324_v16 = vld [vmem:[#allocation8 + $0x60] sm:$0xff]   ;;  %s1524_s17 = scalar_lea.vmem %s887_s5, 128  ;;  %p2099_p2 = scmp.ne.s32.totalorder %s2088_s12, 0 }
  0xdc   : > { %1158 = vmatprep.subr.bf16.mxu1 %v1313_v5  ;;  %v1321_v13 = vld [vmem:[#allocation7 + $0x58] sm:$0xff]   ;;  %v1325_v17 = vld [vmem:[#allocation7 + $0x60] sm:$0xff]   ;;  %v1328_v20 = vld [vmem:[#allocation8 + $0x68] sm:$0xff]   ;;  %p1525_p0 = scmp.ne.s32.totalorder %s887_s5, %s1524_s17  ;;  %s1650_s13 = smov [#allocation13]  }
  0xdd   : > { %v1322_v14 = vld [vmem:[#allocation8 + $0x18] sm:$0xff]   ;;  %v1326_v18 = vld [vmem:[#allocation8 + $0x20] sm:$0xff]   ;;  %v1329_v21 = vld [vmem:[#allocation7 + $0x68] sm:$0xff]   ;;  %s1528_s29 = sshll.u32 %s1650_s13, 4  ;;  %s1529_s29 = int_to_ptr.vmem [resolvable:$false] %s1528_s29 }
  0xde   : > { %1137 = vmatpush3.bf16.msra.mxu0 %v1314_v6  ;;  %v1323_v15 = vld [vmem:[#allocation7 + $0x18] sm:$0xff]   ;;  %v1327_v19 = vld [vmem:[#allocation7 + $0x20] sm:$0xff]   ;;  %v1330_v22 = vld [vmem:[#allocation8 + $0x28] sm:$0xff]   ;;  %p1526_p4 = pnand %p1525_p0, %p2099_p2  ;;  %s1530_s3 = scalar_lea.vmem %s1529_s29, 256 }
  0xdf   : > { %1159 = vmatpush3.bf16.msra.mxu1 %v1315_v7  ;;  %1138 = vmatprep.subr.bf16.mxu0 %v1316_v8  ;;  %v1331_v23 = vld [vmem:[#allocation7 + $0x28] sm:$0xff]   ;;  %v1332_v24 = vld [vmem:[#allocation8 + $0x70] sm:$0xff]   ;;  %v1336_v28 = vld [vmem:[#allocation8 + $0x78] sm:$0xff]   ;;  %p1531_p5 = scmp.lt.s32.totalorder %s887_s5, %s1529_s29  ;;  %p1532_p7 = scmp.lt.s32.totalorder %s1530_s3, %s1524_s17 }
  0xe0   : > { %1160 = vmatprep.subr.bf16.mxu1 %v1317_v9  ;;  %v1333_v25 = vld [vmem:[#allocation7 + $0x70] sm:$0xff]   ;;  %v1337_v29 = vld [vmem:[#allocation7 + $0x78] sm:$0xff]   ;;  %v1340_v40 = vld [vmem:[#allocation11] sm:$0xff]   ;;  %p1527_p10 = pneg %p1526_p4 }
  0xe1   : > { %v1334_v26 = vld [vmem:[#allocation8 + $0x30] sm:$0xff]   ;;  %v1338_v30 = vld [vmem:[#allocation8 + $0x38] sm:$0xff]   ;;  %v1344_v45 = vld [vmem:[#allocation11 + $0x20] sm:$0xff]   ;;  %p1533_p8 = por %p1532_p7, %p1531_p5 }
  0xe2   : > { %1139 = vmatpush3.bf16.msra.mxu0 %v1318_v10  ;;  %v1335_v27 = vld [vmem:[#allocation7 + $0x30] sm:$0xff]   ;;  %v1339_v31 = vld [vmem:[#allocation7 + $0x38] sm:$0xff]   ;;  %v1116_v57 = vld [vmem:[#allocation10] ss:$0 sm:$0xff] }
  0xe3   : > { %1161 = vmatpush3.bf16.msra.mxu1 %v1319_v11  ;;  %1140 = vmatprep.subr.bf16.mxu0 %v1320_v12  ;;  %v406_v32 = vld [vmem:[%s1960_s20 + $0x8] sm:$0xff]  ;;  %v405_v34 = vld [vmem:[%s1960_s20] sm:$0xff]  ;;  %p1534_p6 = pnand %p1533_p8, %p1527_p10 }
  0xe4   : > { %1162 = vmatprep.subr.bf16.mxu1 %v1321_v13  ;;  %v402_v33 = vld [vmem:[%s1953_s22 + $0x8] sm:$0xff]  ;;  %v408_v35 = vpack.c.bf16 %v406_v32, %v406_v32  ;;  %v407_v37 = vpack.c.bf16 %v405_v34, %v405_v34  ;;  %v401_v38 = vld [vmem:[%s1953_s22] sm:$0xff] }
  0xe5   : > { %v404_v36 = vpack.c.bf16 %v402_v33, %v402_v33  ;;  %v403_v39 = vpack.c.bf16 %v401_v38, %v401_v38  ;;  %v1341_v42 = vld [vmem:[#allocation11 + $0x8] sm:$0xff]   ;;  %v1342_v43 = vld [vmem:[#allocation11 + $0x10] sm:$0xff]   ;;  %v1343_v44 = vld [vmem:[#allocation11 + $0x18] sm:$0xff]  }
  0xe6   : > { %1141 = vmatpush3.bf16.msra.mxu0 %v1322_v14  ;;  %601 = vmatprep.mubr.bf16.mxu0 %v408_v35  ;;  %v1345_v46 = vld [vmem:[#allocation11 + $0x28] sm:$0xff]   ;;  %v1346_v47 = vld [vmem:[#allocation11 + $0x30] sm:$0xff]   ;;  %v1347_v48 = vld [vmem:[#allocation11 + $0x38] sm:$0xff]  }
  0xe7   : > { %1163 = vmatpush3.bf16.msra.mxu1 %v1323_v15  ;;  %1142 = vmatprep.subr.bf16.mxu0 %v1324_v16 }
  0xe8   : > { %1164 = vmatprep.subr.bf16.mxu1 %v1325_v17  ;;  %737 = vmatprep.mubr.bf16.mxu1 %v404_v36 }
  0xea   : > { %1143 = vmatpush3.bf16.msra.mxu0 %v1326_v18 }
  0xeb   : > { %1165 = vmatpush3.bf16.msra.mxu1 %v1327_v19  ;;  %1144 = vmatprep.subr.bf16.mxu0 %v1328_v20 }
  0xec   : > { %1166 = vmatprep.subr.bf16.mxu1 %v1329_v21 }
  0xee   : > { %1145 = vmatpush3.bf16.msra.mxu0 %v1330_v22 }
  0xef   : > { %1167 = vmatpush3.bf16.msra.mxu1 %v1331_v23  ;;  %1146 = vmatprep.subr.bf16.mxu0 %v1332_v24 }
  0xf0   : > { %1168 = vmatprep.subr.bf16.mxu1 %v1333_v25 }
  0xf2   : > { %1147 = vmatpush3.bf16.msra.mxu0 %v1334_v26 }
  0xf3   : > { %1169 = vmatpush3.bf16.msra.mxu1 %v1335_v27  ;;  %1148 = vmatprep.subr.bf16.mxu0 %v1336_v28 }
  0xf4   : > { %1170 = vmatprep.subr.bf16.mxu1 %v1337_v29 }
  0xf6   : > { %1149 = vmatpush3.bf16.msra.mxu0 %v1338_v30 }
  0xf7   : > { %1171 = vmatpush3.bf16.msra.mxu1 %v1339_v31  ;;  %1187 = vmatprep.subr.bf16.mxu0 %v1648_v41 }
  0xf9   : > { %602 = vmatmul.mubr.bf16.vlgmr.msra.gmra.mrb[0].mxu0 %v407_v37 }
  0xfa   : > { %738 = vmatmul.mubr.bf16.vlgmr.msra.gmra.mrb[0].mxu1 %v403_v39  ;;  %1188 = vmatpush3.bf16.msra.mxu0 %v1340_v40 }
  0xfb   : > { %1189 = vmatprep.subr.bf16.mxu0 %v1648_v41  ;;  %1203 = vmatprep.mubr.msk.bf16.mxu0 %vm1649_vm0, %v1648_v41 }
  0xfe   : > { %1190 = vmatpush3.bf16.msra.mxu0 %v1341_v42 }
  0xff   : > { %1191 = vmatprep.subr.bf16.mxu0 %v1648_v41 }
 0x102   : > { %1192 = vmatpush3.bf16.msra.mxu0 %v1342_v43 }
 0x103   : > { %1193 = vmatprep.subr.bf16.mxu0 %v1648_v41 }
 0x106   : > { %1194 = vmatpush3.bf16.msra.mxu0 %v1343_v44 }
 0x107   : > { %1195 = vmatprep.subr.bf16.mxu0 %v1648_v41 }
 0x10a   : > { %1196 = vmatpush3.bf16.msra.mxu0 %v1344_v45 }
 0x10b   : > { %1197 = vmatprep.subr.bf16.mxu0 %v1648_v41 }
 0x10e   : > { %1198 = vmatpush3.bf16.msra.mxu0 %v1345_v46 }
 0x10f   : > { %1199 = vmatprep.subr.bf16.mxu0 %v1648_v41 }
 0x112   : > { %1200 = vmatpush3.bf16.msra.mxu0 %v1346_v47 }
 0x113   : > { %1201 = vmatprep.subr.bf16.mxu0 %v1648_v41 }
 0x116   : > { %1202 = vmatpush3.bf16.msra.mxu0 %v1347_v48 }
 0x1cc   : > { %v1150_v49 = vpop.f32.mrb[0].mxu0 }
 0x1cd   : > { %v1172_v50 = vpop.f32.mrb[0].mxu1  ;;  %v1151_v51 = vpop.f32.mrb[1].mxu0 }
 0x1ce   : > { %v1173_v52 = vpop.f32.mrb[1].mxu1  ;;  %v1152_v53 = vadd.f32 %v1151_v51, %v1150_v49  ;;  %v1153_v55 = vpop.f32.mrb[2].mxu0 }
 0x1cf   : > { %v1174_v54 = vadd.f32 %v1173_v52, %v1172_v50  ;;  %v1175_v56 = vpop.f32.mrb[2].mxu1  ;;  %v1154_v58 = vpop.f32.mrb[3].mxu0 }
 0x1d0   : > { %v1176_v59 = vpop.f32.mrb[3].mxu1 }
 0x1d1   : > { %v740_v60 = vadd.f32 %v1174_v54, %v1152_v53 }
 0x1d3   : > { %v752_v61 = vadd.f32 %v1116_v57, %v740_v60 }
 0x1d5   : > { %v1117_v62 = vmul.f32 -1.442695, %v752_v61 }
 0x1d7   : > { %1348 = vpow2.f32 %v1117_v62 }
 0x1e1   : > { %v1349_v63 = vpop.eup %1348 }
 0x1e2   : > { %v756_v0 = vadd.f32 1.0, %v1349_v63 }
 0x1e4   : > { %1350 = vrcp.f32 %v756_v0 }
 0x1ee   : > { %v1351_v1 = vpop.eup %1350 }
 0x1ef   : > { %v759_v2 = vmul.f32 %v1351_v1, %v752_v61 }
 0x1f1   : > { %v761_v3 = vpack.c.bf16 %v759_v2, %v759_v2  ;;  %760 = vst [vmem:[%s392_s4] sm:$0xff] %v759_v2 }
 0x1f3   : > { %1204 = vmatmul.mubr.bf16.vlgmr.msra.gmra.mrb[4].mxu0 %v761_v3 }
 0x1f4   : > { %1537 = shalt.err (!%p1534_p6)
}
 0x1f5   : > { %s1538_s21 = scalar_lea.hbm %s1991_s9, 128  ;;  %s1542_s8 = scalar_lea.hbm %s2068_s6, 256 }
 0x1f6   : > { %p1539_p11 = scmp.ne.s32.totalorder %s1991_s9, %s1538_s21  ;;  %p1543_p12 = scmp.lt.u32.totalorder %s1991_s9, %s2068_s6 }
 0x1f7   : > { %p1544_p3 = scmp.lt.u32.totalorder %s1542_s8, %s1538_s21  ;;  %p1546_p0 = scmp.lt.u32.totalorder %s1538_s21, %s1991_s9 }
 0x1f8   : > { %p1540_p1 = pnand %p1539_p11, %p2099_p2 }
 0x1f9   : > { %p1545_p13 = por %p1544_p3, %p1543_p12 }
 0x1fa   : > { %p1541_p9 = pneg %p1540_p1 }
 0x1fb   : > { %p1547_p4 = por %p1546_p0, %p1545_p13 }
 0x1fd   : > { %p1548_p10 = pnand %p1547_p4, %p1541_p9 }
 0x1ff   : > { %1551 = shalt.err (!%p1548_p10)
}
 0x200   : > { %1227 = dma.vmem_to_hbm [thread:$0]  (%p2099_p2), %s887_s5, 128, %s1991_s9, %s868_s2  }
 0x201   : > { %s399_s28 = scalar_lea.vmem [#allocation14], %s1082_s23  ;;  %s2020_s29 = scalar_lea.hbm %s2069_s7, %s1128_s15 }
 0x202   : > { %s899_s18 = sshll.u32 %s399_s28, 4  ;;  %s873_s3 = scalar_lea.sflag [#allocation15], %s1949_s10  ;;  %s2013_s18 = int_to_ptr.vmem [resolvable:$true] %s899_s18 }
 0x203   : > { %s1552_s9 = scalar_lea.vmem %s2013_s18, 128  ;;  %s1651_s23 = smov [#allocation14]  }
 0x204   : > { %p1553_p5 = scmp.ne.s32.totalorder %s2013_s18, %s1552_s9  ;;  %s1556_s30 = sshll.u32 %s1651_s23, 4  ;;  %s1557_s30 = int_to_ptr.vmem [resolvable:$false] %s1556_s30 }
 0x205   : > { %s1558_s5 = scalar_lea.vmem %s1557_s30, 256  ;;  %p1559_p6 = scmp.lt.s32.totalorder %s2013_s18, %s1557_s30 }
 0x206   : > { %p1554_p7 = pnand %p1553_p5, %p2099_p2  ;;  %p1560_p11 = scmp.lt.s32.totalorder %s1558_s5, %s1552_s9 }
 0x208   : > { %p1555_p8 = pneg %p1554_p7  ;;  %p1561_p1 = por %p1560_p11, %p1559_p6 }
 0x20a   : > { %p1562_p9 = pnand %p1561_p1, %p1555_p8 }
 0x2c6   : > { %v860_v4 = vpop.f32.mrb[4].mxu0 }
 0x2c7   : > { %866 = vst [vmem:[%s399_s28] sm:$0xff] %v860_v4  ;;  %v1205_v5 = vpop.f32.mrb[5].mxu0 }
 0x2c8   : > { %v863_v6 = vpop.f32.mrb[6].mxu0 }
 0x2c9   : > { %1565 = shalt.err (!%p1562_p9)
}
 0x2ca   : > { %s1566_s10 = scalar_lea.hbm %s2020_s29, 128  ;;  %s1570_s21 = scalar_lea.hbm %s2069_s7, 256 }
 0x2cb   : > { %p1567_p12 = scmp.ne.s32.totalorder %s2020_s29, %s1566_s10  ;;  %p1571_p0 = scmp.lt.u32.totalorder %s2020_s29, %s2069_s7 }
 0x2cc   : > { %p1572_p4 = scmp.lt.u32.totalorder %s1570_s21, %s1566_s10  ;;  %p1574_p5 = scmp.lt.u32.totalorder %s1566_s10, %s2020_s29 }
 0x2cd   : > { %p1568_p3 = pnand %p1567_p12, %p2099_p2 }
 0x2ce   : > { %p1573_p10 = por %p1572_p4, %p1571_p0 }
 0x2cf   : > { %p1569_p13 = pneg %p1568_p3 }
 0x2d0   : > { %p1575_p7 = por %p1574_p5, %p1573_p10 }
 0x2d2   : > { %p1576_p8 = pnand %p1575_p7, %p1569_p13 }
 0x2d4   : > { %1579 = shalt.err (!%p1576_p8)
}
 0x2d5   : > { %1228 = dma.vmem_to_hbm [thread:$0]  (%p2099_p2), %s2013_s18, 128, %s2020_s29, %s873_s3   ;;  %v1206_v7 = vpop.f32.mrb[7].mxu0 }
 0x2d6 PF: > { %s911_s8 = sand.u32 1, %s1626_s24   ;;  %p2100_p6 = scmp.ne.s32.totalorder %s2089_s16, 0 }
 0x2d7   : > { %p2101_p11 = scmp.ge.s32.totalorder %s1638_s27, 2  ;;  %s912_s20 = scalar_lea.sflag [#allocation4], %s911_s8 }
 0x2d9   : > { %p1252_p1 = pnand %p2101_p11, %p2100_p6 }
 0x2db   : > { %1617 = dma.done.wait (!%p1252_p1), %s912_s20, 128  }
 0x2dc   : > { %1619 = vsyncadd (!%p1252_p1), %s912_s20, 4294967168  ;;  %s921_s4 = scalar_lea.sflag [#allocation15], %s911_s8 }
 0x2dd   : > { %1621 = dma.done.wait (!%p1252_p1), %s921_s4, 128  }
 0x2de   : > { %1623 = vsyncadd (!%p1252_p1), %s921_s4, 4294967168  ;;  %p29_p2 = scmp.ge.s32.totalorder %s1842_s19, 4   ;;  %s2102_s24 = smov %s1630_s25 }
 0x2df   : > { %s2103_s25 = smov %s1634_s26  ;;  %s2104_s26 = smov %s1853_s14 }
 0x2e0   : > { %s2105_s27 = smov %s1842_s19  ;;  %31 = sbr.rel (!%p29_p2) target bundleno = 16 (0x10), region = 135 }
 0x2e7   :  { %926 = vsyncpa [#allocation3], 1 }
 0x2e8   :  { %928 = vsyncpa [#allocation3 + $0x1], 1 }
 0x2e9   :  { %929 = vsyncpa [#allocation6], 1 }
 0x2ea   :  { %931 = vsyncpa [#allocation6 + $0x1], 1 }
 0x2eb   :  { %932 = vsyncpa [#allocation9], 1 }
 0x2ec   :  { %933 = vsyncpa [#allocation12], 1 }
 0x2ed   :  { %934 = vsyncpa [#allocation4], 1 }
 0x2ee   :  { %936 = vsyncpa [#allocation4 + $0x1], 1 }
 0x2ef   :  { %937 = vsyncpa [#allocation15], 1 }
 0x2f0   :  { %939 = vsyncpa [#allocation15 + $0x1], 1 }

</bundles_post_ra>
